<compile_context>
chip_gen: v7x
topology: tpu7x:2x2x1
jax: 0.10.0
libtpu: 0.0.40
codegen_flags: <defaults>
</compile_context>

<pallas_src>
import numpy as np
import jax
import jax.numpy as jnp
from jax.experimental import pallas as pl
from jax.experimental.pallas import tpu as pltpu


# ---------------------------------------------------------------------------
# Pooling-matrix construction (PyTorch adaptive window convention).
# ---------------------------------------------------------------------------
def _adaptive_pool_matrix(in_size: int, out_size: int) -> np.ndarray:
    """Row-stochastic (out_size, in_size) matrix for 1-D adaptive avg pool."""
    A = np.zeros((out_size, in_size), dtype=np.float32)
    for i in range(out_size):
        start = (i * in_size) // out_size
        end = -((-(i + 1) * in_size) // out_size)      # ceil((i+1)*in/out)
        A[i, start:end] = 1.0 / float(end - start)
    return A


# ---------------------------------------------------------------------------
# Generation-aware VMEM budgeting.
# ---------------------------------------------------------------------------
def _vmem_capacity_bytes() -> int:
    try:
        cap = int(pltpu.get_tpu_info().vmem_capacity_bytes)
        if cap > 0:
            return cap
    except Exception:
        pass
    return 64 * 1024 * 1024          # conservative fallback (v7x per-core VMEM)


def _choose_row_tile(B, K, N, in_isz, out_isz, budget, fixed):
    """Rows per grid step: as many as fit `budget`, counting the
    double-buffered input/output tiles, the f32 matmul intermediate, and the
    resident pooling matrix (`fixed`)."""
    per_row = 2 * K * in_isz + 2 * N * out_isz + N * 4
    avail = max(budget - fixed, per_row)
    tb = max(1, avail // per_row)
    if B >= 16:
        # keep >= 2 grid blocks so the "parallel" axis can shard across the
        # two v7x TensorCores
        tb = min(tb, -(-B // 2))
    if tb >= B:
        return B
    tb = max(8, (tb // 8) * 8)       # sublane-aligned blocks
    return min(tb, B)


def _const_block_spec(shape, single_buffer):
    """BlockSpec for an operand that is identical for every grid step."""
    ndim = len(shape)
    index_map = lambda b: (0,) * ndim
    if single_buffer:
        # fetched once -> no point double-buffering it; frees VMEM headroom
        return pl.BlockSpec(shape, index_map, pipeline_mode=pl.Buffered(1))
    return pl.BlockSpec(shape, index_map)


# ---------------------------------------------------------------------------
# Kernel 1: row-wise matmul  (TB, K) @ (K, N) -> (TB, N)
# Used for the fused-kron path and for the W-pooling stage.
# ---------------------------------------------------------------------------
def _rowwise_matmul_kernel(x_ref, p_ref, o_ref):
    o_ref[...] = jnp.dot(
        x_ref[...], p_ref[...], preferred_element_type=jnp.float32
    ).astype(o_ref.dtype)


def _rowwise_matmul(x2d, p, out_dtype, budget, vmem_limit):
    B, K = x2d.shape
    Kp, N = p.shape
    assert Kp == K
    in_isz = jnp.dtype(x2d.dtype).itemsize
    out_isz = jnp.dtype(out_dtype).itemsize

    cost = pl.CostEstimate(
        flops=2 * B * K * N,
        transcendentals=0,
        bytes_accessed=B * K * in_isz + K * N * 4 + B * N * out_isz,
    )

    def run(single_buffer_p):
        fixed = (1 if single_buffer_p else 2) * K * N * 4
        tb = _choose_row_tile(B, K, N, in_isz, out_isz, budget, fixed)
        grid = (pl.cdiv(B, tb),)
        return pl.pallas_call(
            _rowwise_matmul_kernel,
            out_shape=jax.ShapeDtypeStruct((B, N), out_dtype),
            grid_spec=pl.GridSpec(
                grid=grid,
                in_specs=[
                    pl.BlockSpec((tb, K), lambda b: (b, 0)),
                    _const_block_spec((K, N), single_buffer_p),
                ],
                out_specs=pl.BlockSpec((tb, N), lambda b: (b, 0)),
            ),
            compiler_params=pltpu.CompilerParams(
                dimension_semantics=("parallel",),
                vmem_limit_bytes=vmem_limit,
            ),
            cost_estimate=cost,
        )(x2d, p)

    try:
        return run(True)        # single-buffered pooling matrix
    except Exception:
        return run(False)       # fall back to default double-buffering


# ---------------------------------------------------------------------------
# Kernel 2: batched H pooling  A_h(OH,H) @ t(TB,H,OW) -> (TB,OH,OW)
# Used only by the separable fallback path.
# ---------------------------------------------------------------------------
def _pool_h_kernel(t_ref, a_ref, o_ref):
    t = t_ref[...].astype(jnp.float32)                       # (TB, H, OW)
    a = a_ref[...]                                           # (OH, H) f32
    a_b = jnp.broadcast_to(a[None, :, :], (t.shape[0], a.shape[0], a.shape[1]))
    o_ref[...] = jnp.einsum(
        "bph,bho->bpo", a_b, t, preferred_element_type=jnp.float32
    ).astype(o_ref.dtype)


def _pool_h_batched(t3, a_h, out_dtype, budget, vmem_limit):
    B, H, OW = t3.shape
    OH = a_h.shape[0]
    in_isz = jnp.dtype(t3.dtype).itemsize
    out_isz = jnp.dtype(out_dtype).itemsize

    cost = pl.CostEstimate(
        flops=2 * B * OH * H * OW,
        transcendentals=0,
        bytes_accessed=B * H * OW * in_isz + OH * H * 4 + B * OH * OW * out_isz,
    )

    def run(single_buffer_a):
        fixed = (1 if single_buffer_a else 2) * OH * H * 4
        per_row = (2 * H * OW * in_isz + 2 * OH * OW * out_isz
                   + OH * OW * 4 + H * OW * 4 + OH * H * 4)
        avail = max(budget - fixed, per_row)
        tb = max(1, avail // per_row)
        if B >= 16:
            tb = min(tb, -(-B // 2))
        tb = min(tb, B)
        grid = (pl.cdiv(B, tb),)
        return pl.pallas_call(
            _pool_h_kernel,
            out_shape=jax.ShapeDtypeStruct((B, OH, OW), out_dtype),
            grid_spec=pl.GridSpec(
                grid=grid,
                in_specs=[
                    pl.BlockSpec((tb, H, OW), lambda b: (b, 0, 0)),
                    _const_block_spec((OH, H), single_buffer_a),
                ],
                out_specs=pl.BlockSpec((tb, OH, OW), lambda b: (b, 0, 0)),
            ),
            compiler_params=pltpu.CompilerParams(
                dimension_semantics=("parallel",),
                vmem_limit_bytes=vmem_limit,
            ),
            cost_estimate=cost,
        )(t3, a_h)

    try:
        return run(True)
    except Exception:
        return run(False)


# ---------------------------------------------------------------------------
# Public wrapper (same semantics as nn.AdaptiveAvgPool2d forward).
# ---------------------------------------------------------------------------
def adaptive_avg_pool2d(x: jax.Array, output_size, *, force_separable=False):
    """x: (N, C, H, W) -> (N, C, OH, OW)."""
    if isinstance(output_size, int):
        output_size = (output_size, output_size)
    N, C, H, W = x.shape
    OH, OW = output_size
    B, HW, OHOW = N * C, H * W, OH * OW

    cap = _vmem_capacity_bytes()
    budget = int(cap * 0.6)        # working-set target for tile sizing
    vmem_limit = int(cap * 0.85)   # explicit scoped-VMEM ceiling

    a_h = _adaptive_pool_matrix(H, OH)        # (OH, H)
    a_w = _adaptive_pool_matrix(W, OW)        # (OW, W)

    # Fused kron path only while the fused pooling matrix stays comfortably
    # small; it grows as HW*OHOW and would otherwise blow VMEM / MXU FLOPs.
    use_kron = (not force_separable) and (HW * OHOW * 4 <= budget // 4)

    if use_kron:
        # P^T[h*W + w, oh*OW + ow] = A_h[oh, h] * A_w[ow, w]; kept in f32 so
        # the 1/window weights are exact (matches PyTorch); acc is f32.
        p_t = jnp.asarray(np.kron(a_h, a_w).T)              # (HW, OHOW) f32
        out_flat = _rowwise_matmul(x.reshape(B, HW), p_t, x.dtype,
                                   budget, vmem_limit)       # (B, OHOW)
        return out_flat.reshape(N, C, OH, OW)

    # Separable two-stage fallback: pool W, then pool H.
    t = _rowwise_matmul(x.reshape(B * H, W), jnp.asarray(a_w.T), x.dtype,
                        budget, vmem_limit)                  # (B*H, OW)
    out3 = _pool_h_batched(t.reshape(B, H, OW), jnp.asarray(a_h), x.dtype,
                           budget, vmem_limit)               # (B, OH, OW)
    return out3.reshape(N, C, OH, OW)


# ---------------------------------------------------------------------------
# Pure-JAX reference (identical semantics to PyTorch AdaptiveAvgPool2d).
# ---------------------------------------------------------------------------
def _reference(x, output_size):
    if isinstance(output_size, int):
        output_size = (output_size, output_size)
    a_h = jnp.asarray(_adaptive_pool_matrix(x.shape[2], output_size[0]))
    a_w = jnp.asarray(_adaptive_pool_matrix(x.shape[3], output_size[1]))
    return jnp.einsum("oh,nchw,pw->ncop", a_h, x, a_w)


if __name__ == "__main__":
    key = jax.random.PRNGKey(0)
    N, C, H, W = 2, 4, 16, 16
    output_size = (7, 5)     # non-divisible -> exercises the adaptive windows

    x = jax.random.normal(key, (N, C, H, W), dtype=jnp.float32)
    ref = _reference(x, output_size)

    # Fused-kron path (the one small-output workloads take).
    out = jax.block_until_ready(adaptive_avg_pool2d(x, output_size))
    assert out.shape == (N, C, output_size[0], output_size[1])
    assert jnp.allclose(out, ref, atol=1e-5, rtol=1e-5)

    # Separable fallback path (taken automatically for large H*W * OH*OW).
    out_sep = jax.block_until_ready(
        adaptive_avg_pool2d(x, output_size, force_separable=True))
    assert jnp.allclose(out_sep, ref, atol=1e-5, rtol=1e-5)

    print("KERNEL_OK")
</pallas_src>

<mosaic_0001>
module attributes {stable_mosaic.version = 11 : i64} {
  func.func @_rowwise_matmul_kernel(%arg0: i32, %arg1: memref<8x256xf32, #tpu.memory_space<vmem>>, %arg2: memref<256x35xf32, #tpu.memory_space<vmem>>, %arg3: memref<8x35xf32, #tpu.memory_space<vmem>>) attributes {dimension_semantics = [#tpu.dimension_semantics<parallel>], iteration_bounds = array<i64: 1>, scalar_prefetch = 0 : i64, scratch_operands = 0 : i64, tpu.core_type = #tpu.core_type<tc>, window_params = [{transform_indices = @transform_0, window_bounds = array<i64: 8, 256>}, {pipeline_mode = #tpu.pipeline_mode<synchronous>, transform_indices = @transform_1, window_bounds = array<i64: 256, 35>}, {transform_indices = @transform_2, window_bounds = array<i64: 8, 35>}]} {
    %c0 = arith.constant 0 : index
    %c0_0 = arith.constant 0 : index
    %0 = vector.load %arg1[%c0, %c0_0] : memref<8x256xf32, #tpu.memory_space<vmem>>, vector<8x256xf32>
    %c0_1 = arith.constant 0 : index
    %c0_2 = arith.constant 0 : index
    %1 = vector.load %arg2[%c0_1, %c0_2] : memref<256x35xf32, #tpu.memory_space<vmem>>, vector<256x35xf32>
    %cst = arith.constant dense<0.000000e+00> : vector<8x35xf32>
    %2 = tpu.matmul %0, %1, %cst {dimension_numbers = #tpu.dot_dimension_numbers<[1], [0], [0], [1], [0, 0, 1, 1], [], []>} : vector<8x256xf32>, vector<256x35xf32>, vector<8x35xf32> -> vector<8x35xf32>
    %c0_3 = arith.constant 0 : index
    %c0_4 = arith.constant 0 : index
    %3 = vector.load %arg3[%c0_3, %c0_4] : memref<8x35xf32, #tpu.memory_space<vmem>>, vector<8x35xf32>
    tpu.vector_store %arg3[%c0_3, %c0_4], %2 {strides = array<i32>} : memref<8x35xf32, #tpu.memory_space<vmem>>, vector<8x35xf32>,
    return
  }
  func.func @transform_0(%arg0: i32) -> (i32, i32) {
    %c0_i32 = arith.constant 0 : i32
    %c0_i32_0 = arith.constant 0 : i32
    return %arg0, %c0_i32 : i32, i32
  }
  func.func @transform_1(%arg0: i32) -> (i32, i32) {
    %c0_i32 = arith.constant 0 : i32
    %c0_i32_0 = arith.constant 0 : i32
    %c0_i32_1 = arith.constant 0 : i32
    return %c0_i32, %c0_i32_0 : i32, i32
  }
  func.func @transform_2(%arg0: i32) -> (i32, i32) {
    %c0_i32 = arith.constant 0 : i32
    %c0_i32_0 = arith.constant 0 : i32
    return %arg0, %c0_i32 : i32, i32
  }
}

module attributes {stable_mosaic.version = 11 : i64} {
  func.func @_rowwise_matmul_kernel(%arg0: i32, %arg1: memref<8x256xf32, #tpu.memory_space<vmem>>, %arg2: memref<256x35xf32, #tpu.memory_space<vmem>>, %arg3: memref<8x35xf32, #tpu.memory_space<vmem>>) attributes {dimension_semantics = [#tpu.dimension_semantics<parallel>], iteration_bounds = array<i64: 1>, scalar_prefetch = 0 : i64, scratch_operands = 0 : i64, tpu.core_type = #tpu.core_type<tc>, window_params = [{transform_indices = @transform_0, window_bounds = array<i64: 8, 256>}, {pipeline_mode = #tpu.pipeline_mode<synchronous>, transform_indices = @transform_1, window_bounds = array<i64: 256, 35>}, {transform_indices = @transform_2, window_bounds = array<i64: 8, 35>}]} {
    %c0 = arith.constant 0 : index
    %c0_0 = arith.constant 0 : index
    %0 = vector.load %arg1[%c0, %c0_0] : memref<8x256xf32, #tpu.memory_space<vmem>>, vector<8x256xf32>
    %c0_1 = arith.constant 0 : index
    %c0_2 = arith.constant 0 : index
    %1 = vector.load %arg2[%c0_1, %c0_2] : memref<256x35xf32, #tpu.memory_space<vmem>>, vector<256x35xf32>
    %cst = arith.constant dense<0.000000e+00> : vector<8x35xf32>
    %2 = tpu.matmul %0, %1, %cst {dimension_numbers = #tpu.dot_dimension_numbers<[1], [0], [0], [1], [0, 0, 1, 1], [], []>} : vector<8x256xf32>, vector<256x35xf32>, vector<8x35xf32> -> vector<8x35xf32>
    %c0_3 = arith.constant 0 : index
    %c0_4 = arith.constant 0 : index
    %3 = vector.load %arg3[%c0_3, %c0_4] : memref<8x35xf32, #tpu.memory_space<vmem>>, vector<8x35xf32>
    tpu.vector_store %arg3[%c0_3, %c0_4], %2 {strides = array<i32>} : memref<8x35xf32, #tpu.memory_space<vmem>>, vector<8x35xf32>,
    return
  }
  func.func @transform_0(%arg0: i32) -> (i32, i32) {
    %c0_i32 = arith.constant 0 : i32
    %c0_i32_0 = arith.constant 0 : i32
    return %arg0, %c0_i32 : i32, i32
  }
  func.func @transform_1(%arg0: i32) -> (i32, i32) {
    %c0_i32 = arith.constant 0 : i32
    %c0_i32_0 = arith.constant 0 : i32
    %c0_i32_1 = arith.constant 0 : i32
    return %c0_i32, %c0_i32_0 : i32, i32
  }
  func.func @transform_2(%arg0: i32) -> (i32, i32) {
    %c0_i32 = arith.constant 0 : i32
    %c0_i32_0 = arith.constant 0 : i32
    return %arg0, %c0_i32 : i32, i32
  }
}

</mosaic_0001>

<bundles_post_ra>
// kernel: tpu_custom_call.1
= control target key start
LH: loop header
LB: loop body
LE: loop exit
PB: predicated region body
PF: predicated region fallthrough
CT: control target
= control target key end

     0   :  { %s354_s0 = inlined_call_operand.vmem [shape: f32[8,256], index: 0, kind: input, shape index: {}]   ;;  %s355_s1 = inlined_call_operand.vmem [shape: f32[256,35], index: 1, kind: input, shape index: {}]   ;;  %s356_s2 = inlined_call_operand.hbm [shape: f32[8,35], index: 2, kind: output, shape index: {}]  }
   0x1   :  { %v30_v0 = vld [vmem:[%s355_s1 + $0x80] sm:$0xff]  ;;  %v31_v1 = vld [vmem:[%s355_s1 + $0x88] sm:$0xff]  ;;  %v32_v5 = vld [vmem:[%s355_s1 + $0x90] sm:$0xff] }
   0x2   :  { %v14_v2 = vld [vmem:[%s355_s1] sm:$0xff]  ;;  %v167_v3 = vpack.c.bf16 %v31_v1, %v30_v0  ;;  %v15_v4 = vld [vmem:[%s355_s1 + $0x8] sm:$0xff]  ;;  %v33_v6 = vld [vmem:[%s355_s1 + $0x98] sm:$0xff] }
   0x3   :  { %v169_v7 = vpack.c.bf16 %v15_v4, %v14_v2  ;;  %v171_v8 = vpack.c.bf16 %v33_v6, %v32_v5  ;;  %v16_v9 = vld [vmem:[%s355_s1 + $0x10] sm:$0xff]  ;;  %v17_v10 = vld [vmem:[%s355_s1 + $0x18] sm:$0xff]  ;;  %v34_v11 = vld [vmem:[%s355_s1 + $0xa0] sm:$0xff] }
   0x4   :  { %168 = vmatprep.subr.bf16.mxu0 %v167_v3  ;;  %v35_v12 = vld [vmem:[%s355_s1 + $0xa8] sm:$0xff]  ;;  %v173_v13 = vpack.c.bf16 %v17_v10, %v16_v9  ;;  %v18_v15 = vld [vmem:[%s355_s1 + $0x20] sm:$0xff]  ;;  %v36_v17 = vld [vmem:[%s355_s1 + $0xb0] sm:$0xff] }
   0x5   :  { %170 = vmatpush3.bf16.msra.mxu0 %v169_v7  ;;  %v175_v14 = vpack.c.bf16 %v35_v12, %v34_v11  ;;  %v19_v16 = vld [vmem:[%s355_s1 + $0x28] sm:$0xff]  ;;  %v37_v18 = vld [vmem:[%s355_s1 + $0xb8] sm:$0xff]  ;;  %v20_v21 = vld [vmem:[%s355_s1 + $0x30] sm:$0xff] }
   0x6   :  { %172 = vmatprep.subr.bf16.mxu0 %v171_v8  ;;  %v177_v19 = vpack.c.bf16 %v19_v16, %v18_v15  ;;  %v179_v20 = vpack.c.bf16 %v37_v18, %v36_v17  ;;  %v21_v22 = vld [vmem:[%s355_s1 + $0x38] sm:$0xff]  ;;  %v38_v23 = vld [vmem:[%s355_s1 + $0xc0] sm:$0xff]  ;;  %v39_v24 = vld [vmem:[%s355_s1 + $0xc8] sm:$0xff] }
   0x7   :  { %v13_v25 = vld [vmem:[%s354_s0 + $0x8] sm:$0xff] }
   0x8   :  { %110 = vmatprep.mubr.f32.mxu0 %v13_v25 }
   0x9   :  { %174 = vmatpush3.bf16.msra.mxu0 %v173_v13 }
   0xa   :  { %176 = vmatprep.subr.bf16.mxu0 %v175_v14 }
   0xb   :  { %7 = vsyncpa [#allocation3], 0  ;;  %v181_v26 = vpack.c.bf16 %v21_v22, %v20_v21  ;;  %v183_v27 = vpack.c.bf16 %v39_v24, %v38_v23  ;;  %v22_v28 = vld [vmem:[%s355_s1 + $0x40] sm:$0xff]  ;;  %v23_v29 = vld [vmem:[%s355_s1 + $0x48] sm:$0xff]  ;;  %s224_s21 = smov [#allocation2]   ;;  %vm116_vm0 = vcmask 285696  }
   0xc   :  { %v40_v30 = vld [vmem:[%s355_s1 + $0xd0] sm:$0xff]  ;;  %v41_v31 = vld [vmem:[%s355_s1 + $0xd8] sm:$0xff]  ;;  %v185_v32 = vpack.c.bf16 %v23_v29, %v22_v28  ;;  %v42_v36 = vld [vmem:[%s355_s1 + $0xe0] sm:$0xff]  ;;  %s124_s22 = sshll.u32 %s224_s21, 4  ;;  %s125_s22 = int_to_ptr.vmem [resolvable:$true] %s124_s22 }
   0xd   :  { %178 = vmatpush3.bf16.msra.mxu0 %v177_v19  ;;  %v187_v33 = vpack.c.bf16 %v41_v31, %v40_v30  ;;  %v24_v34 = vld [vmem:[%s355_s1 + $0x50] sm:$0xff]  ;;  %v25_v35 = vld [vmem:[%s355_s1 + $0x58] sm:$0xff]  ;;  %v43_v37 = vld [vmem:[%s355_s1 + $0xe8] sm:$0xff]  ;;  %s200_s23 = scalar_lea.vmem %s125_s22, 128  ;;  %p205_p1 = scmp.lt.s32.totalorder %s125_s22, %s125_s22 }
   0xe   :  { %180 = vmatprep.subr.bf16.mxu0 %v179_v20  ;;  %v189_v38 = vpack.c.bf16 %v25_v35, %v24_v34  ;;  %v191_v39 = vpack.c.bf16 %v43_v37, %v42_v36  ;;  %v26_v40 = vld [vmem:[%s355_s1 + $0x60] sm:$0xff]  ;;  %v27_v41 = vld [vmem:[%s355_s1 + $0x68] sm:$0xff]  ;;  %v44_v42 = vld [vmem:[%s355_s1 + $0xf0] sm:$0xff]  ;;  %p201_p0 = scmp.ne.s32.totalorder %s125_s22, %s200_s23  ;;  %p206_p2 = scmp.lt.s32.totalorder %s200_s23, %s200_s23 }
   0xf   :  { %v45_v43 = vld [vmem:[%s355_s1 + $0xf8] sm:$0xff]  ;;  %v193_v44 = vpack.c.bf16 %v27_v41, %v26_v40  ;;  %v28_v46 = vld [vmem:[%s355_s1 + $0x70] sm:$0xff]  ;;  %v12_v49 = vld [vmem:[%s354_s0] sm:$0xff] }
  0x10   :  { %v195_v45 = vpack.c.bf16 %v45_v43, %v44_v42  ;;  %v29_v47 = vld [vmem:[%s355_s1 + $0x78] sm:$0xff]  ;;  %p207_p3 = por %p206_p2, %p205_p1 }
  0x11   :  { %182 = vmatpush3.bf16.msra.mxu0 %v181_v26  ;;  %v197_v48 = vpack.c.bf16 %v29_v47, %v28_v46 }
  0x12   :  { %184 = vmatprep.subr.bf16.mxu0 %v183_v27  ;;  %p208_p4 = pnand %p207_p3, %p201_p0 }
  0x15   :  { %186 = vmatpush3.bf16.msra.mxu0 %v185_v32 }
  0x16   :  { %188 = vmatprep.subr.bf16.mxu0 %v187_v33 }
  0x19   :  { %190 = vmatpush3.bf16.msra.mxu0 %v189_v38 }
  0x1a   :  { %192 = vmatprep.subr.bf16.mxu0 %v191_v39 }
  0x1d   :  { %194 = vmatpush3.bf16.msra.mxu0 %v193_v44 }
  0x1e   :  { %196 = vmatprep.subr.bf16.mxu0 %v195_v45 }
  0x21   :  { %198 = vmatpush3.bf16.msra.mxu0 %v197_v48 }
  0x24   :  { %111 = vmatmul.mubr.f32.vlgmr.msra.gmra.mrb[0].mxu0 %v12_v49 }
  0xf7   :  { %v164_v50 = vpop.f32.mrb[0].mxu0 }
  0xf8   :  { %v165_v51 = vpop.f32.mrb[1].mxu0 }
  0xf9   :  { %v166_v52 = vadd.f32 %v165_v51, %v164_v50 }
  0xfb   :  { %117 = vst.msk [vmem:[#allocation2] sm:$0xff] %vm116_vm0, %v166_v52 }
  0xfc   :  { %211 = shalt.err (!%p208_p4)
}
  0xfd   :  { %s212_s0 = scalar_lea.hbm %s356_s2, 128 }
  0xfe   :  { %p213_p5 = scmp.ne.s32.totalorder %s356_s2, %s212_s0  ;;  %p216_p6 = scmp.lt.u32.totalorder %s212_s0, %s356_s2 }
 0x100   :  { %p218_p7 = pnand %p216_p6, %p213_p5 }
 0x102   :  { %221 = shalt.err (!%p218_p7)
}
 0x103   :  { %127 = dma.vmem_to_hbm [thread:$0]  %s125_s22, 128, %s356_s2, [#allocation3]  }
 0x104   :  { %222 = dma.done.wait [#allocation3], 128  }
 0x105   :  { %223 = vsyncadd [#allocation3], 4294967168 }
 0x106   :  { %131 = vsyncpa [#allocation3], 1 }

// kernel: tpu_custom_call.1
= control target key start
LH: loop header
LB: loop body
LE: loop exit
PB: predicated region body
PF: predicated region fallthrough
CT: control target
= control target key end

     0   :  { %s354_s0 = inlined_call_operand.vmem [shape: f32[8,256], index: 0, kind: input, shape index: {}]   ;;  %s355_s1 = inlined_call_operand.vmem [shape: f32[256,35], index: 1, kind: input, shape index: {}]   ;;  %s356_s2 = inlined_call_operand.hbm [shape: f32[8,35], index: 2, kind: output, shape index: {}]  }
   0x1   :  { %v30_v0 = vld [vmem:[%s355_s1 + $0x80] sm:$0xff]  ;;  %v31_v1 = vld [vmem:[%s355_s1 + $0x88] sm:$0xff]  ;;  %v32_v5 = vld [vmem:[%s355_s1 + $0x90] sm:$0xff] }
   0x2   :  { %v14_v2 = vld [vmem:[%s355_s1] sm:$0xff]  ;;  %v167_v3 = vpack.c.bf16 %v31_v1, %v30_v0  ;;  %v15_v4 = vld [vmem:[%s355_s1 + $0x8] sm:$0xff]  ;;  %v33_v6 = vld [vmem:[%s355_s1 + $0x98] sm:$0xff] }
   0x3   :  { %v169_v7 = vpack.c.bf16 %v15_v4, %v14_v2  ;;  %v171_v8 = vpack.c.bf16 %v33_v6, %v32_v5  ;;  %v16_v9 = vld [vmem:[%s355_s1 + $0x10] sm:$0xff]  ;;  %v17_v10 = vld [vmem:[%s355_s1 + $0x18] sm:$0xff]  ;;  %v34_v11 = vld [vmem:[%s355_s1 + $0xa0] sm:$0xff] }
   0x4   :  { %168 = vmatprep.subr.bf16.mxu0 %v167_v3  ;;  %v35_v12 = vld [vmem:[%s355_s1 + $0xa8] sm:$0xff]  ;;  %v173_v13 = vpack.c.bf16 %v17_v10, %v16_v9  ;;  %v18_v15 = vld [vmem:[%s355_s1 + $0x20] sm:$0xff]  ;;  %v36_v17 = vld [vmem:[%s355_s1 + $0xb0] sm:$0xff] }
   0x5   :  { %170 = vmatpush3.bf16.msra.mxu0 %v169_v7  ;;  %v175_v14 = vpack.c.bf16 %v35_v12, %v34_v11  ;;  %v19_v16 = vld [vmem:[%s355_s1 + $0x28] sm:$0xff]  ;;  %v37_v18 = vld [vmem:[%s355_s1 + $0xb8] sm:$0xff]  ;;  %v20_v21 = vld [vmem:[%s355_s1 + $0x30] sm:$0xff] }
   0x6   :  { %172 = vmatprep.subr.bf16.mxu0 %v171_v8  ;;  %v177_v19 = vpack.c.bf16 %v19_v16, %v18_v15  ;;  %v179_v20 = vpack.c.bf16 %v37_v18, %v36_v17  ;;  %v21_v22 = vld [vmem:[%s355_s1 + $0x38] sm:$0xff]  ;;  %v38_v23 = vld [vmem:[%s355_s1 + $0xc0] sm:$0xff]  ;;  %v39_v24 = vld [vmem:[%s355_s1 + $0xc8] sm:$0xff] }
   0x7   :  { %v13_v25 = vld [vmem:[%s354_s0 + $0x8] sm:$0xff] }
   0x8   :  { %110 = vmatprep.mubr.f32.mxu0 %v13_v25 }
   0x9   :  { %174 = vmatpush3.bf16.msra.mxu0 %v173_v13 }
   0xa   :  { %176 = vmatprep.subr.bf16.mxu0 %v175_v14 }
   0xb   :  { %7 = vsyncpa [#allocation3], 0  ;;  %v181_v26 = vpack.c.bf16 %v21_v22, %v20_v21  ;;  %v183_v27 = vpack.c.bf16 %v39_v24, %v38_v23  ;;  %v22_v28 = vld [vmem:[%s355_s1 + $0x40] sm:$0xff]  ;;  %v23_v29 = vld [vmem:[%s355_s1 + $0x48] sm:$0xff]  ;;  %s224_s21 = smov [#allocation2]   ;;  %vm116_vm0 = vcmask 285696  }
   0xc   :  { %v40_v30 = vld [vmem:[%s355_s1 + $0xd0] sm:$0xff]  ;;  %v41_v31 = vld [vmem:[%s355_s1 + $0xd8] sm:$0xff]  ;;  %v185_v32 = vpack.c.bf16 %v23_v29, %v22_v28  ;;  %v42_v36 = vld [vmem:[%s355_s1 + $0xe0] sm:$0xff]  ;;  %s124_s22 = sshll.u32 %s224_s21, 4  ;;  %s125_s22 = int_to_ptr.vmem [resolvable:$true] %s124_s22 }
   0xd   :  { %178 = vmatpush3.bf16.msra.mxu0 %v177_v19  ;;  %v187_v33 = vpack.c.bf16 %v41_v31, %v40_v30  ;;  %v24_v34 = vld [vmem:[%s355_s1 + $0x50] sm:$0xff]  ;;  %v25_v35 = vld [vmem:[%s355_s1 + $0x58] sm:$0xff]  ;;  %v43_v37 = vld [vmem:[%s355_s1 + $0xe8] sm:$0xff]  ;;  %s200_s23 = scalar_lea.vmem %s125_s22, 128  ;;  %p205_p1 = scmp.lt.s32.totalorder %s125_s22, %s125_s22 }
   0xe   :  { %180 = vmatprep.subr.bf16.mxu0 %v179_v20  ;;  %v189_v38 = vpack.c.bf16 %v25_v35, %v24_v34  ;;  %v191_v39 = vpack.c.bf16 %v43_v37, %v42_v36  ;;  %v26_v40 = vld [vmem:[%s355_s1 + $0x60] sm:$0xff]  ;;  %v27_v41 = vld [vmem:[%s355_s1 + $0x68] sm:$0xff]  ;;  %v44_v42 = vld [vmem:[%s355_s1 + $0xf0] sm:$0xff]  ;;  %p201_p0 = scmp.ne.s32.totalorder %s125_s22, %s200_s23  ;;  %p206_p2 = scmp.lt.s32.totalorder %s200_s23, %s200_s23 }
   0xf   :  { %v45_v43 = vld [vmem:[%s355_s1 + $0xf8] sm:$0xff]  ;;  %v193_v44 = vpack.c.bf16 %v27_v41, %v26_v40  ;;  %v28_v46 = vld [vmem:[%s355_s1 + $0x70] sm:$0xff]  ;;  %v12_v49 = vld [vmem:[%s354_s0] sm:$0xff] }
  0x10   :  { %v195_v45 = vpack.c.bf16 %v45_v43, %v44_v42  ;;  %v29_v47 = vld [vmem:[%s355_s1 + $0x78] sm:$0xff]  ;;  %p207_p3 = por %p206_p2, %p205_p1 }
  0x11   :  { %182 = vmatpush3.bf16.msra.mxu0 %v181_v26  ;;  %v197_v48 = vpack.c.bf16 %v29_v47, %v28_v46 }
  0x12   :  { %184 = vmatprep.subr.bf16.mxu0 %v183_v27  ;;  %p208_p4 = pnand %p207_p3, %p201_p0 }
  0x15   :  { %186 = vmatpush3.bf16.msra.mxu0 %v185_v32 }
  0x16   :  { %188 = vmatprep.subr.bf16.mxu0 %v187_v33 }
  0x19   :  { %190 = vmatpush3.bf16.msra.mxu0 %v189_v38 }
  0x1a   :  { %192 = vmatprep.subr.bf16.mxu0 %v191_v39 }
  0x1d   :  { %194 = vmatpush3.bf16.msra.mxu0 %v193_v44 }
  0x1e   :  { %196 = vmatprep.subr.bf16.mxu0 %v195_v45 }
  0x21   :  { %198 = vmatpush3.bf16.msra.mxu0 %v197_v48 }
  0x24   :  { %111 = vmatmul.mubr.f32.vlgmr.msra.gmra.mrb[0].mxu0 %v12_v49 }
  0xf7   :  { %v164_v50 = vpop.f32.mrb[0].mxu0 }
  0xf8   :  { %v165_v51 = vpop.f32.mrb[1].mxu0 }
  0xf9   :  { %v166_v52 = vadd.f32 %v165_v51, %v164_v50 }
  0xfb   :  { %117 = vst.msk [vmem:[#allocation2] sm:$0xff] %vm116_vm0, %v166_v52 }
  0xfc   :  { %211 = shalt.err (!%p208_p4)
}
  0xfd   :  { %s212_s0 = scalar_lea.hbm %s356_s2, 128 }
  0xfe   :  { %p213_p5 = scmp.ne.s32.totalorder %s356_s2, %s212_s0  ;;  %p216_p6 = scmp.lt.u32.totalorder %s212_s0, %s356_s2 }
 0x100   :  { %p218_p7 = pnand %p216_p6, %p213_p5 }
 0x102   :  { %221 = shalt.err (!%p218_p7)
}
 0x103   :  { %127 = dma.vmem_to_hbm [thread:$0]  %s125_s22, 128, %s356_s2, [#allocation3]  }
 0x104   :  { %222 = dma.done.wait [#allocation3], 128  }
 0x105   :  { %223 = vsyncadd [#allocation3], 4294967168 }
 0x106   :  { %131 = vsyncpa [#allocation3], 1 }

</bundles_post_ra>
